<compile_context>
chip_gen: v5e
topology: v5e:2x2
jax: 0.10.0
libtpu: 0.0.40
codegen_flags: <defaults>
</compile_context>

<pallas_src>
import math
import numpy as np
import jax
import jax.numpy as jnp
from jax.experimental import pallas as pl
from jax.experimental.pallas import tpu as pltpu


def _round_up(x, m):
    return ((x + m - 1) // m) * m


def _gelu_tanh(x):
    # tanh-approximation GELU, matching the PyTorch module exactly (f32).
    c = jnp.sqrt(jnp.asarray(2.0 / jnp.pi, dtype=x.dtype))
    return 0.5 * x * (1.0 + jnp.tanh(c * (x + 0.044715 * x * x * x)))


# ----------------------------- kernels --------------------------------------

def ffn_kernel_f32_out(x_ref, w1_ref, b1_ref, w2_ref, b2_ref, o_ref):
    """f32 output: accumulate directly into the out block (resident over k)."""
    k = pl.program_id(1)

    @pl.when(k == 0)
    def _():
        o_ref[...] = jnp.zeros_like(o_ref)

    h = jnp.dot(x_ref[...], w1_ref[...], preferred_element_type=jnp.float32)
    h = h + b1_ref[...]                       # per-hidden-tile bias (pre-GELU)
    g = _gelu_tanh(h)                         # f32 activation (EUP tanh)
    o_ref[...] += jnp.dot(g.astype(w2_ref.dtype), w2_ref[...],
                          preferred_element_type=jnp.float32)

    @pl.when(k == pl.num_programs(1) - 1)
    def _():
        o_ref[...] += b2_ref[...]             # b2 added exactly once


def ffn_kernel_scratch(x_ref, w1_ref, b1_ref, w2_ref, b2_ref, o_ref, acc_ref):
    """Low-precision output: accumulate in an f32 VMEM scratch, cast at the end."""
    k = pl.program_id(1)

    @pl.when(k == 0)
    def _():
        acc_ref[...] = jnp.zeros_like(acc_ref)

    h = jnp.dot(x_ref[...], w1_ref[...], preferred_element_type=jnp.float32)
    h = h + b1_ref[...]
    g = _gelu_tanh(h)
    acc_ref[...] += jnp.dot(g.astype(w2_ref.dtype), w2_ref[...],
                            preferred_element_type=jnp.float32)

    @pl.when(k == pl.num_programs(1) - 1)
    def _():
        o_ref[...] = (acc_ref[...] + b2_ref[...]).astype(o_ref.dtype)


# --------------------------- tiling heuristics -------------------------------

def _chip_defaults():
    """Per-generation tiling defaults (row tile cap, hidden tile cap, VMEM limit)."""
    try:
        kind = jax.devices()[0].device_kind.lower()
    except Exception:
        kind = ""
    if "v7" in kind or "7x" in kind:
        # 64 MiB VMEM/TC, 2 TCs/chip: smaller hidden tiles, conservative limit.
        return dict(tm_max=256, th_max=512, vmem_limit=44 * 1024 * 1024, num_cores=2)
    if "v6" in kind:
        # 128 MiB VMEM, 1 TC: bigger row tiles raise weight reuse.
        return dict(tm_max=512, th_max=2048, vmem_limit=100 * 1024 * 1024, num_cores=1)
    if "v5" in kind:
        # 128 MiB VMEM; prefer larger hidden tiles over larger row tiles.
        return dict(tm_max=256, th_max=2048, vmem_limit=100 * 1024 * 1024, num_cores=1)
    # Unknown chip: conservative (fits v7x's 64 MiB budget).
    return dict(tm_max=256, th_max=512, vmem_limit=44 * 1024 * 1024, num_cores=1)


def _divisor_tiles(H_pad):
    """All multiples of 128 that evenly divide H_pad, ascending."""
    n_units = H_pad // 128
    return [d * 128 for d in range(1, n_units + 1) if n_units % d == 0]


def _footprint(tm, tH, E_pad, cd_bytes, out_bytes, use_scratch):
    """Rough double-buffered VMEM footprint of one grid step (bytes)."""
    buf = 2 * (tm * E_pad * cd_bytes        # x block
               + E_pad * tH * cd_bytes      # W1 block
               + 8 * tH * 4                 # b1 block (padded sublanes)
               + tH * E_pad * cd_bytes      # W2 block
               + 8 * E_pad * 4              # b2 block
               + tm * E_pad * out_bytes)    # out block
    if use_scratch:
        buf += tm * E_pad * 4               # f32 accumulator
    return buf


# ------------------------------ wrappers -------------------------------------

def prepare_ffn_params(w1, b1, w2, b2, *, compute_dtype=jnp.bfloat16):
    """Pad + cast the weights ONCE (hoisted out of the per-call path)."""
    E, H = w1.shape
    assert w2.shape == (H, E) and b1.shape == (H,) and b2.shape == (E,)
    E_pad = _round_up(E, 128)
    H_pad = _round_up(H, 128)
    return dict(
        w1=jnp.pad(w1, ((0, E_pad - E), (0, H_pad - H))).astype(compute_dtype),
        w2=jnp.pad(w2, ((0, H_pad - H), (0, E_pad - E))).astype(compute_dtype),
        b1=jnp.pad(b1, (0, H_pad - H)).reshape(1, H_pad).astype(jnp.float32),
        b2=jnp.pad(b2, (0, E_pad - E)).reshape(1, E_pad).astype(jnp.float32),
        E=E, H=H, E_pad=E_pad, H_pad=H_pad, compute_dtype=compute_dtype,
    )


def feed_forward(x, params):
    """x: (B, S, E) -> (B, S, E), using pre-padded/pre-cast params."""
    B, S, E = x.shape
    assert E == params["E"]
    E_pad, H_pad = params["E_pad"], params["H_pad"]
    cd = params["compute_dtype"]
    cfg = _chip_defaults()

    N = B * S
    out_dtype = x.dtype
    use_scratch = (out_dtype != jnp.float32)
    cd_bytes = jnp.dtype(cd).itemsize
    out_bytes = jnp.dtype(out_dtype).itemsize

    # Row tile: 16-aligned for bf16 sublane packing, capped per chip.
    align = 16 if cd == jnp.bfloat16 else 8
    tm = min(cfg["tm_max"], _round_up(N, align))
    N_pad = _round_up(N, tm)
    # On 2-TC chips make sure the "parallel" axis has >= num_cores programs.
    if cfg["num_cores"] > 1 and N_pad // tm < cfg["num_cores"] and N > align * cfg["num_cores"]:
        tm = _round_up(-(-N // cfg["num_cores"]), align)
        N_pad = _round_up(N, tm)

    # Hidden tile: largest multiple of 128 that divides H_pad, fits the cap and
    # the VMEM budget.
    budget = cfg["vmem_limit"] - 4 * 1024 * 1024
    tH = 128
    for cand in _divisor_tiles(H_pad):
        if cand <= cfg["th_max"] and _footprint(tm, cand, E_pad, cd_bytes,
                                                out_bytes, use_scratch) <= budget:
            tH = cand
    # If even the smallest hidden tile does not fit (huge E), shrink the row tile.
    while _footprint(tm, tH, E_pad, cd_bytes, out_bytes, use_scratch) > budget and tm > align:
        tm = max(align, _round_up(tm // 2, align))
        N_pad = _round_up(N, tm)

    grid = (N_pad // tm, H_pad // tH)

    # Per-call input padding + cast (only x; weights were prepared once).
    x2d = jnp.pad(x.reshape(N, E), ((0, N_pad - N), (0, E_pad - E))).astype(cd)

    kernel = ffn_kernel_scratch if use_scratch else ffn_kernel_f32_out
    scratch = [pltpu.VMEM((tm, E_pad), jnp.float32)] if use_scratch else []

    cost = pl.CostEstimate(
        flops=4 * N_pad * E_pad * H_pad,
        transcendentals=N_pad * H_pad,
        bytes_accessed=(N_pad * E_pad * (cd_bytes + out_bytes)
                        + grid[0] * (2 * E_pad * H_pad * cd_bytes
                                     + 4 * (H_pad + E_pad))),
    )

    out2d = pl.pallas_call(
        kernel,
        out_shape=jax.ShapeDtypeStruct((N_pad, E_pad), out_dtype),
        grid_spec=pltpu.PrefetchScalarGridSpec(
            num_scalar_prefetch=0,
            grid=grid,
            in_specs=[
                pl.BlockSpec((tm, E_pad), lambda i, k: (i, 0)),   # x rows (resident over k)
                pl.BlockSpec((E_pad, tH), lambda i, k: (0, k)),   # W1 hidden tile
                pl.BlockSpec((1, tH), lambda i, k: (0, k)),       # b1 hidden tile
                pl.BlockSpec((tH, E_pad), lambda i, k: (k, 0)),   # W2 hidden tile
                pl.BlockSpec((1, E_pad), lambda i, k: (0, 0)),    # b2
            ],
            out_specs=pl.BlockSpec((tm, E_pad), lambda i, k: (i, 0)),
            scratch_shapes=scratch,
        ),
        compiler_params=pltpu.CompilerParams(
            dimension_semantics=("parallel", "arbitrary"),
            vmem_limit_bytes=cfg["vmem_limit"],
        ),
        cost_estimate=cost,
    )(x2d, params["w1"], params["b1"], params["w2"], params["b2"])

    return out2d[:N, :E].reshape(B, S, E)


def feed_forward_from_raw(x, w1, b1, w2, b2):
    """Convenience wrapper: prepare params then run (prefer prepare once + reuse)."""
    return feed_forward(x, prepare_ffn_params(w1, b1, w2, b2))


def feed_forward_ref(x, w1, b1, w2, b2):
    h = jnp.einsum("bse,eh->bsh", x, w1) + b1
    g = _gelu_tanh(h)
    return jnp.einsum("bsh,he->bse", g, w2) + b2


if __name__ == "__main__":
    # cfg = {'emb_dim': 32} -> hidden = 4 * 32 = 128
    B, S, E = 2, 8, 32
    H = 4 * E

    key = jax.random.PRNGKey(0)
    kx, kw1, kb1, kw2, kb2 = jax.random.split(key, 5)

    x = jax.random.normal(kx, (B, S, E), dtype=jnp.float32)
    # Deterministic init mimicking nn.Linear's uniform(-1/sqrt(in), 1/sqrt(in)).
    lim1 = 1.0 / math.sqrt(E)
    lim2 = 1.0 / math.sqrt(H)
    w1 = jax.random.uniform(kw1, (E, H), jnp.float32, -lim1, lim1)
    b1 = jax.random.uniform(kb1, (H,), jnp.float32, -lim1, lim1)
    w2 = jax.random.uniform(kw2, (H, E), jnp.float32, -lim2, lim2)
    b2 = jax.random.uniform(kb2, (E,), jnp.float32, -lim2, lim2)

    # Prepare (pad + bf16-cast) the weights once, reuse across calls.
    params = prepare_ffn_params(w1, b1, w2, b2)

    out = jax.block_until_ready(feed_forward(x, params))
    ref = jax.block_until_ready(feed_forward_ref(x, w1, b1, w2, b2))

    # bf16 MXU operands with f32 accumulation -> loosened tolerance vs f32 ref.
    # TODO(synk): pass compute_dtype=jnp.float32 to prepare_ffn_params for f32-exact results.
    np.testing.assert_allclose(np.asarray(out), np.asarray(ref), rtol=5e-2, atol=5e-2)

    print("KERNEL_OK")
</pallas_src>

<mosaic_0001>
module attributes {stable_mosaic.version = 11 : i64} {
  func.func @ffn_kernel_f32_out(%arg0: i32, %arg1: i32, %arg2: memref<16x128xbf16, #tpu.memory_space<vmem>>, %arg3: memref<128x128xbf16, #tpu.memory_space<vmem>>, %arg4: memref<1x128xf32, #tpu.memory_space<vmem>>, %arg5: memref<128x128xbf16, #tpu.memory_space<vmem>>, %arg6: memref<1x128xf32, #tpu.memory_space<vmem>>, %arg7: memref<16x128xf32, #tpu.memory_space<vmem>>) attributes {dimension_semantics = [#tpu.dimension_semantics<parallel>, #tpu.dimension_semantics<arbitrary>], iteration_bounds = array<i64: 1, 1>, scalar_prefetch = 0 : i64, scratch_operands = 0 : i64, tpu.core_type = #tpu.core_type<tc>, window_params = [{transform_indices = @transform_0, window_bounds = array<i64: 16, 128>}, {transform_indices = @transform_1, window_bounds = array<i64: 128, 128>}, {transform_indices = @transform_2, window_bounds = array<i64: 1, 128>}, {transform_indices = @transform_3, window_bounds = array<i64: 128, 128>}, {pipeline_mode = #tpu.pipeline_mode<synchronous>, transform_indices = @transform_4, window_bounds = array<i64: 1, 128>}, {transform_indices = @transform_5, window_bounds = array<i64: 16, 128>}]} {
    %c0_i32 = arith.constant 0 : i32
    %0 = arith.cmpi eq, %arg1, %c0_i32 : i32
    %1 = arith.extui %0 : i1 to i32
    %c0_i32_0 = arith.constant 0 : i32
    %2 = arith.cmpi ne, %1, %c0_i32_0 : i32
    scf.if %2 {
      %cst_19 = arith.constant 0.000000e+00 : f32
      %32 = vector.broadcast %cst_19 : f32 to vector<16x128xf32>
      %c0_20 = arith.constant 0 : index
      %c0_21 = arith.constant 0 : index
      %33 = vector.load %arg7[%c0_20, %c0_21] : memref<16x128xf32, #tpu.memory_space<vmem>>, vector<16x128xf32>
      tpu.vector_store %arg7[%c0_20, %c0_21], %32 {strides = array<i32>} : memref<16x128xf32, #tpu.memory_space<vmem>>, vector<16x128xf32>,
    } else {
    }
    %c0 = arith.constant 0 : index
    %c0_1 = arith.constant 0 : index
    %3 = vector.load %arg2[%c0, %c0_1] : memref<16x128xbf16, #tpu.memory_space<vmem>>, vector<16x128xbf16>
    %c0_2 = arith.constant 0 : index
    %c0_3 = arith.constant 0 : index
    %4 = vector.load %arg3[%c0_2, %c0_3] : memref<128x128xbf16, #tpu.memory_space<vmem>>, vector<128x128xbf16>
    %cst = arith.constant dense<0.000000e+00> : vector<16x128xf32>
    %5 = tpu.matmul %3, %4, %cst {dimension_numbers = #tpu.dot_dimension_numbers<[1], [0], [0], [1], [0, 0, 1, 1], [], []>} : vector<16x128xbf16>, vector<128x128xbf16>, vector<16x128xf32> -> vector<16x128xf32>
    %c0_4 = arith.constant 0 : index
    %c0_5 = arith.constant 0 : index
    %6 = vector.load %arg4[%c0_4, %c0_5] : memref<1x128xf32, #tpu.memory_space<vmem>>, vector<1x128xf32>
    %7 = vector.broadcast %6 : vector<1x128xf32> to vector<16x128xf32>
    %8 = arith.addf %5, %7 : vector<16x128xf32>
    %cst_6 = arith.constant 0.636619746 : f32
    %9 = math.sqrt %cst_6 : f32
    %cst_7 = arith.constant 5.000000e-01 : f32
    %10 = vector.broadcast %cst_7 : f32 to vector<16x128xf32>
    %11 = arith.mulf %10, %8 : vector<16x128xf32>
    %cst_8 = arith.constant 4.471500e-02 : f32
    %12 = vector.broadcast %cst_8 : f32 to vector<16x128xf32>
    %13 = arith.mulf %12, %8 : vector<16x128xf32>
    %14 = arith.mulf %13, %8 : vector<16x128xf32>
    %15 = arith.mulf %14, %8 : vector<16x128xf32>
    %16 = arith.addf %8, %15 : vector<16x128xf32>
    %17 = vector.broadcast %9 : f32 to vector<16x128xf32>
    %18 = arith.mulf %17, %16 : vector<16x128xf32>
    %19 = math.tanh %18 : vector<16x128xf32>
    %cst_9 = arith.constant 1.000000e+00 : f32
    %20 = vector.broadcast %cst_9 : f32 to vector<16x128xf32>
    %21 = arith.addf %20, %19 : vector<16x128xf32>
    %22 = arith.mulf %11, %21 : vector<16x128xf32>
    %c0_10 = arith.constant 0 : index
    %c0_11 = arith.constant 0 : index
    %23 = vector.load %arg7[%c0_10, %c0_11] : memref<16x128xf32, #tpu.memory_space<vmem>>, vector<16x128xf32>
    %24 = arith.truncf %22 : vector<16x128xf32> to vector<16x128xbf16>
    %c0_12 = arith.constant 0 : index
    %c0_13 = arith.constant 0 : index
    %25 = vector.load %arg5[%c0_12, %c0_13] : memref<128x128xbf16, #tpu.memory_space<vmem>>, vector<128x128xbf16>
    %cst_14 = arith.constant dense<0.000000e+00> : vector<16x128xf32>
    %26 = tpu.matmul %24, %25, %cst_14 {dimension_numbers = #tpu.dot_dimension_numbers<[1], [0], [0], [1], [0, 0, 1, 1], [], []>} : vector<16x128xbf16>, vector<128x128xbf16>, vector<16x128xf32> -> vector<16x128xf32>
    %27 = arith.addf %23, %26 : vector<16x128xf32>
    %c0_15 = arith.constant 0 : index
    %c0_16 = arith.constant 0 : index
    %28 = vector.load %arg7[%c0_15, %c0_16] : memref<16x128xf32, #tpu.memory_space<vmem>>, vector<16x128xf32>
    tpu.vector_store %arg7[%c0_15, %c0_16], %27 {strides = array<i32>} : memref<16x128xf32, #tpu.memory_space<vmem>>, vector<16x128xf32>,
    %c0_i32_17 = arith.constant 0 : i32
    %29 = arith.cmpi eq, %arg1, %c0_i32_17 : i32
    %30 = arith.extui %29 : i1 to i32
    %c0_i32_18 = arith.constant 0 : i32
    %31 = arith.cmpi ne, %30, %c0_i32_18 : i32
    scf.if %31 {
      %c0_19 = arith.constant 0 : index
      %c0_20 = arith.constant 0 : index
      %32 = vector.load %arg7[%c0_19, %c0_20] : memref<16x128xf32, #tpu.memory_space<vmem>>, vector<16x128xf32>
      %c0_21 = arith.constant 0 : index
      %c0_22 = arith.constant 0 : index
      %33 = vector.load %arg6[%c0_21, %c0_22] : memref<1x128xf32, #tpu.memory_space<vmem>>, vector<1x128xf32>
      %34 = vector.broadcast %33 : vector<1x128xf32> to vector<16x128xf32>
      %35 = arith.addf %32, %34 : vector<16x128xf32>
      %c0_23 = arith.constant 0 : index
      %c0_24 = arith.constant 0 : index
      %36 = vector.load %arg7[%c0_23, %c0_24] : memref<16x128xf32, #tpu.memory_space<vmem>>, vector<16x128xf32>
      tpu.vector_store %arg7[%c0_23, %c0_24], %35 {strides = array<i32>} : memref<16x128xf32, #tpu.memory_space<vmem>>, vector<16x128xf32>,
    } else {
    }
    return
  }
  func.func @transform_0(%arg0: i32, %arg1: i32) -> (i32, i32) {
    %c0_i32 = arith.constant 0 : i32
    %c0_i32_0 = arith.constant 0 : i32
    return %arg0, %c0_i32 : i32, i32
  }
  func.func @transform_1(%arg0: i32, %arg1: i32) -> (i32, i32) {
    %c0_i32 = arith.constant 0 : i32
    %c0_i32_0 = arith.constant 0 : i32
    return %c0_i32, %arg1 : i32, i32
  }
  func.func @transform_2(%arg0: i32, %arg1: i32) -> (i32, i32) {
    %c0_i32 = arith.constant 0 : i32
    %c0_i32_0 = arith.constant 0 : i32
    return %c0_i32, %arg1 : i32, i32
  }
  func.func @transform_3(%arg0: i32, %arg1: i32) -> (i32, i32) {
    %c0_i32 = arith.constant 0 : i32
    %c0_i32_0 = arith.constant 0 : i32
    return %arg1, %c0_i32 : i32, i32
  }
  func.func @transform_4(%arg0: i32, %arg1: i32) -> (i32, i32) {
    %c0_i32 = arith.constant 0 : i32
    %c0_i32_0 = arith.constant 0 : i32
    %c0_i32_1 = arith.constant 0 : i32
    return %c0_i32, %c0_i32_0 : i32, i32
  }
  func.func @transform_5(%arg0: i32, %arg1: i32) -> (i32, i32) {
    %c0_i32 = arith.constant 0 : i32
    %c0_i32_0 = arith.constant 0 : i32
    return %arg0, %c0_i32 : i32, i32
  }
}

</mosaic_0001>

<bundles_post_ra>
// kernel: tpu_custom_call.1
= control target key start
LH: loop header
LB: loop body
LE: loop exit
PB: predicated region body
PF: predicated region fallthrough
CT: control target
= control target key end

     0   :  { %10 = vsyncpa [#allocation3], 0  ;;  %s558_s0 = inlined_call_operand.hbm [shape: bf16[16,128], index: 0, kind: input, shape index: {}]   ;;  %s559_s1 = inlined_call_operand.hbm [shape: bf16[128,128], index: 1, kind: input, shape index: {}]   ;;  %s560_s2 = inlined_call_operand.vmem [shape: f32[1,128], index: 2, kind: input, shape index: {}]   ;;  %s561_s3 = inlined_call_operand.hbm [shape: bf16[128,128], index: 3, kind: input, shape index: {}]   ;;  %s562_s4 = inlined_call_operand.vmem [shape: f32[1,128], index: 4, kind: input, shape index: {}]   ;;  %s563_s5 = inlined_call_operand.hbm [shape: f32[16,128], index: 5, kind: output, shape index: {}]  }
   0x1   :  { %11 = vsyncpa [#allocation6], 0 }
   0x2   :  { %12 = vsyncpa [#allocation4], 0  ;;  %s30_s20 = sshll.u32 %s559_s1, 4  ;;  %s502_s21 = smov [#allocation5]   ;;  %s31_s20 = int_to_ptr.hbm [resolvable:$true] %s30_s20 }
   0x3   :  { %s32_s22 = sshll.u32 %s502_s21, 4  ;;  %s17_s25 = sshll.u32 %s558_s0, 4  ;;  %s33_s22 = int_to_ptr.vmem [resolvable:$true] %s32_s22  ;;  %s18_s25 = int_to_ptr.hbm [resolvable:$true] %s17_s25 }
   0x4   :  { %s503_s26 = smov 64   ;;  %s504_s27 = smov 4  }
   0x5   :  { %38 = dma.hbm_to_vmem [thread:$0]  %s31_s20, 1024, %s33_s22, [#allocation6], %s503_s26, %s503_s26, %s504_s27  }
   0x6   :  { %s505_s28 = smov [#allocation2]   ;;  %s45_s7 = sshll.u32 %s561_s3, 4  ;;  %s46_s7 = int_to_ptr.hbm [resolvable:$true] %s45_s7 }
   0x7   :  { %s19_s29 = sshll.u32 %s505_s28, 4  ;;  %s506_s1 = smov [#allocation7]   ;;  %s20_s29 = int_to_ptr.vmem [resolvable:$true] %s19_s29 }
   0x8   :  { %25 = dma.hbm_to_vmem [thread:$0]  %s18_s25, 128, %s20_s29, [#allocation3], %s503_s26, %s503_s26, %s504_s27  }
   0x9   :  { %s47_s8 = sshll.u32 %s506_s1, 4  ;;  %s48_s8 = int_to_ptr.vmem [resolvable:$true] %s47_s8 }
   0xa   :  { %53 = dma.hbm_to_vmem [thread:$0]  %s46_s7, 1024, %s48_s8, [#allocation6], %s503_s26, %s503_s26, %s504_s27  }
   0xb   :  { %496 = dma.done.wait [#allocation3], 128  }
   0xc   :  { %497 = vsyncadd [#allocation3], 4294967168 }
   0xd   :  { %498 = dma.done.wait [#allocation6], 2048  }
   0xe   :  { %499 = vsyncadd [#allocation6], 4294965248  ;;  %v376_v0 = vld [vmem:[#allocation5 + $0x38] sm:$0xff]  ;;  %v375_v1 = vld [vmem:[#allocation5 + $0x30] sm:$0xff]  ;;  %s507_s10 = smov [#allocation8]   ;;  %s286_s14 = sshll.u32 %s563_s5, 4  ;;  %s287_s14 = int_to_ptr.hbm [resolvable:$true] %s286_s14 }
   0xf   :  { %150 = vmatpush.bf16.msra.mxu0 %v376_v0  ;;  %v374_v2 = vld [vmem:[#allocation5 + $0x28] sm:$0xff]  ;;  %v373_v3 = vld [vmem:[#allocation5 + $0x20] sm:$0xff]  ;;  %v372_v4 = vld [vmem:[#allocation5 + $0x18] sm:$0xff]  ;;  %s284_s11 = sshll.u32 %s507_s10, 4  ;;  %s508_s15 = smov 128   ;;  %s285_s11 = int_to_ptr.vmem [resolvable:$true] %s284_s11 }
  0x10   :  { %v371_v5 = vld [vmem:[#allocation5 + $0x10] sm:$0xff]  ;;  %v370_v6 = vld [vmem:[#allocation5 + $0x8] sm:$0xff]  ;;  %v369_v7 = vld [vmem:[#allocation5] sm:$0xff]  ;;  %s509_s16 = smov 8  }
  0x11   :  { %v368_v8 = vld [vmem:[#allocation2] sm:$0xff]  ;;  %v383_v10 = vld [vmem:[#allocation7 + $0x30] sm:$0xff]  ;;  %v382_v11 = vld [vmem:[#allocation7 + $0x28] sm:$0xff] }
  0x12   :  { %v384_v9 = vld [vmem:[#allocation7 + $0x38] sm:$0xff]  ;;  %v381_v12 = vld [vmem:[#allocation7 + $0x20] sm:$0xff]  ;;  %v379_v14 = vld [vmem:[#allocation7 + $0x10] sm:$0xff] }
  0x13   :  { %151 = vmatpush.bf16.msra.mxu0 %v375_v1  ;;  %249 = vmatpush.bf16.msra.mxu1 %v384_v9  ;;  %v380_v13 = vld [vmem:[#allocation7 + $0x18] sm:$0xff]  ;;  %v378_v15 = vld [vmem:[#allocation7 + $0x8] sm:$0xff]  ;;  %v377_v16 = vld [vmem:[#allocation7] sm:$0xff] }
  0x14   :  { %v394_v17 = vld [vmem:[%s560_s2] ss:$0 sm:$0xff] }
  0x15   :  { %v395_v41 = vld [vmem:[%s562_s4] ss:$0 sm:$0xff] }
  0x17   :  { %152 = vmatpush.bf16.msra.mxu0 %v374_v2  ;;  %250 = vmatpush.bf16.msra.mxu1 %v383_v10 }
  0x1b   :  { %153 = vmatpush.bf16.msra.mxu0 %v373_v3  ;;  %251 = vmatpush.bf16.msra.mxu1 %v382_v11 }
  0x1f   :  { %154 = vmatpush.bf16.msra.mxu0 %v372_v4  ;;  %252 = vmatpush.bf16.msra.mxu1 %v381_v12 }
  0x23   :  { %155 = vmatpush.bf16.msra.mxu0 %v371_v5  ;;  %253 = vmatpush.bf16.msra.mxu1 %v380_v13 }
  0x27   :  { %156 = vmatpush.bf16.msra.mxu0 %v370_v6  ;;  %254 = vmatpush.bf16.msra.mxu1 %v379_v14 }
  0x2b   :  { %157 = vmatpush.bf16.msra.mxu0 %v369_v7  ;;  %255 = vmatpush.bf16.msra.mxu1 %v378_v15 }
  0x2e   :  { %158 = vmatmul.bf16.vlgmr.msra.gmra.mxu0 %v368_v8 }
  0x2f   :  { %256 = vmatpush.bf16.msra.mxu1 %v377_v16 }
  0xab   :  { %v159_v18 = vpop.f32.mrf.mxu0 }
  0xac   :  { %v160_v19 = vadd.f32 %v394_v17, %v159_v18 }
  0xae   :  { %v166_v20 = vmul.f32 0.044715, %v160_v19  ;;  %v164_v35 = vmul.f32 0.5, %v160_v19 }
  0xb0   :  { %v168_v21 = vmul.f32 %v166_v20, %v160_v19 }
  0xb2   :  { %v170_v22 = vmul.f32 %v168_v21, %v160_v19 }
  0xb3   :  { %v161_v23 = vpop.f32.mrf.mxu0 }
  0xb4   :  { %v162_v24 = vadd.f32 %v394_v17, %v161_v23  ;;  %v172_v25 = vadd.f32 %v170_v22, %v160_v19 }
  0xb6   :  { %v167_v26 = vmul.f32 0.044715, %v162_v24  ;;  %v174_v28 = vmul.f32 0.7978845, %v172_v25  ;;  %v165_v36 = vmul.f32 0.5, %v162_v24 }
  0xb8   :  { %v169_v27 = vmul.f32 %v167_v26, %v162_v24  ;;  %396 = vtanh.f32 %v174_v28 }
  0xba   :  { %v171_v29 = vmul.f32 %v169_v27, %v162_v24 }
  0xbc   :  { %v173_v30 = vadd.f32 %v171_v29, %v162_v24 }
  0xbe   :  { %v175_v31 = vmul.f32 0.7978845, %v173_v30  ;;  %v397_v32 = vpop.eup %396 }
  0xbf   :  { %v178_v33 = vadd.f32 1.0, %v397_v32 }
  0xc0   :  { %398 = vtanh.f32 %v175_v31 }
  0xc1   :  { %v180_v38 = vmul.f32 %v178_v33, %v164_v35 }
  0xc6   :  { %v399_v34 = vpop.eup %398 }
  0xc7   :  { %v179_v37 = vadd.f32 1.0, %v399_v34 }
  0xc9   :  { %v181_v39 = vmul.f32 %v179_v37, %v165_v36 }
  0xcb   :  { %v184_v40 = vpack.c.bf16 %v181_v39, %v180_v38 }
  0xcd   :  { %257 = vmatmul.bf16.vlgmr.msra.gmra.mxu1 %v184_v40 }
 0x14a   :  { %v258_v42 = vpop.f32.mrf.mxu1 }
 0x14b   :  { %v276_v43 = vadd.f32 %v395_v41, %v258_v42 }
 0x14d   :  { %278 = vst [vmem:[#allocation8] sm:$0xff] %v276_v43 }
 0x152   :  { %v260_v44 = vpop.f32.mrf.mxu1 }
 0x153   :  { %v277_v45 = vadd.f32 %v395_v41, %v260_v44 }
 0x155   :  { %279 = vst [vmem:[#allocation8 + $0x8] sm:$0xff] %v277_v45 }
 0x156   :  { %292 = dma.vmem_to_hbm [thread:$0]  %s285_s11, 256, %s287_s14, [#allocation4], %s508_s15, %s508_s15, %s509_s16  }
 0x157   :  { %500 = dma.done.wait [#allocation4], 256  }
 0x158   :  { %501 = vsyncadd [#allocation4], 4294967040 }
 0x159   :  { %297 = vsyncpa [#allocation3], 1 }
 0x15a   :  { %298 = vsyncpa [#allocation6], 1 }
 0x15b   :  { %299 = vsyncpa [#allocation4], 1 }

</bundles_post_ra>
